<compile_context>
chip_gen: v6e
topology: v6e:2x2x1
jax: 0.10.0
libtpu: 0.0.40
codegen_flags: <defaults>
</compile_context>

<pallas_src>
import jax
import jax.numpy as jnp
from jax import lax
from jax.experimental import pallas as pl
from jax.experimental.pallas import tpu as pltpu

_SUB = 256  # inner sub-chunk width (lanes); 64x256 f32 = 16 vregs per intermediate


def mlp_kernel(x_ref, w1_ref, b1_ref, w2_ref, b2_ref, w3_ref, b3_ref, o_ref):
    # Transposed layout: x_ref is (2, tb); weights are [out, in]; biases [out, 1].
    # Hoist weight/bias loads and bf16 casts out of the inner sub-chunk loop.
    w1c0 = w1_ref[:, 0:1]                      # (64, 1) f32
    w1c1 = w1_ref[:, 1:2]                      # (64, 1) f32
    b1 = b1_ref[...]                           # (64, 1) f32
    b2 = b2_ref[...]                           # (64, 1) f32
    b3 = b3_ref[...]                           # (2, 1)  f32
    w2 = w2_ref[...].astype(jnp.bfloat16)      # (64, 64) MXU operand
    w3 = w3_ref[...].astype(jnp.bfloat16)      # (2, 64)  MXU operand

    tb = x_ref.shape[1]
    sub = _SUB if (tb >= _SUB and tb % _SUB == 0) else tb
    n_sub = tb // sub

    def body(j, carry):
        off = j * sub
        x = x_ref[:, pl.ds(off, sub)].astype(jnp.float32)      # (2, sub)
        x0 = x[0:1, :]
        x1 = x[1:2, :]

        # Layer 1 (K=2): two VPU multiply-adds instead of a wasteful MXU push.
        h1 = jnp.maximum(w1c0 * x0 + w1c1 * x1 + b1, 0.0)       # (64, sub) f32

        # Layer 2: bf16 MXU matmul (64,64)@(64,sub), f32 accumulation.
        h2 = jnp.dot(w2, h1.astype(jnp.bfloat16),
                     preferred_element_type=jnp.float32) + b2   # (64, sub) f32
        h2 = jnp.maximum(h2, 0.0)

        # Layer 3: (2,64)@(64,sub) -> lane-dense (2, sub) store.
        out = jnp.dot(w3, h2.astype(jnp.bfloat16),
                      preferred_element_type=jnp.float32) + b3  # (2, sub) f32
        o_ref[:, pl.ds(off, sub)] = out.astype(o_ref.dtype)
        return carry

    lax.fori_loop(0, n_sub, body, 0, unroll=True)


def _num_tensorcores():
    """2 TensorCores only on v7x; v5e/v6e are single-TC (grid = sequential loop)."""
    try:
        kind = (getattr(jax.devices()[0], "device_kind", "") or "").lower()
        if "v7" in kind:
            return 2
    except Exception:
        pass
    return 1


def _pick_tile(B, tb_max):
    """Pick a batch tile (multiple of _SUB lanes), device-aware.

    1-TC chips: one tile as large as allowed (no extra ~0.35us grid steps).
    v7x: split into >=2 parallel steps only when each TC gets >=1024 lanes.
    """
    lanes = pl.cdiv(B, _SUB) * _SUB
    n_tc = _num_tensorcores()
    if n_tc > 1 and lanes >= n_tc * 1024:
        tb = min(tb_max, pl.cdiv(lanes // _SUB, n_tc) * _SUB)
    else:
        tb = min(tb_max, lanes)
    tb = max(_SUB, (tb // _SUB) * _SUB)
    B_pad = pl.cdiv(lanes, tb) * tb
    return tb, B_pad


def simple_unet_forward_t(x_t, t, params, *, tb_max=2048):
    """Transposed-layout forward: x_t is [Din, B]; returns [Dout, B]. `t` is unused.

    Preferred entry point inside a DDPM sampling loop (no per-step transposes).
    """
    del t  # forward ignores the timestep, matching the PyTorch module
    w1, b1, w2, b2, w3, b3 = params
    Din, B = x_t.shape
    H1 = w1.shape[0]      # 64
    H2 = w2.shape[0]      # 64
    Dout = w3.shape[0]    # 2

    tb, B_pad = _pick_tile(B, tb_max)
    if B_pad != B:
        x_t = jnp.pad(x_t, ((0, 0), (0, B_pad - B)))

    grid = (B_pad // tb,)
    full = lambda i: (0, 0)   # weights/biases: same whole-array block every step

    flops = 2 * B_pad * (H1 * Din + H2 * H1 + Dout * H2)
    bytes_accessed = 4 * (B_pad * (Din + Dout)
                          + H1 * Din + H2 * H1 + Dout * H2 + H1 + H2 + Dout)

    out_t = pl.pallas_call(
        mlp_kernel,
        out_shape=jax.ShapeDtypeStruct((Dout, B_pad), x_t.dtype),
        grid_spec=pltpu.PrefetchScalarGridSpec(
            num_scalar_prefetch=0,
            grid=grid,
            in_specs=[
                pl.BlockSpec((Din, tb), lambda i: (0, i)),   # x (transposed) batch tile
                pl.BlockSpec((H1, Din), full),               # w1 [64, 2]
                pl.BlockSpec((H1, 1), full),                 # b1 [64, 1]
                pl.BlockSpec((H2, H1), full),                # w2 [64, 64]
                pl.BlockSpec((H2, 1), full),                 # b2 [64, 1]
                pl.BlockSpec((Dout, H2), full),              # w3 [2, 64]
                pl.BlockSpec((Dout, 1), full),               # b3 [2, 1]
            ],
            out_specs=pl.BlockSpec((Dout, tb), lambda i: (0, i)),
        ),
        compiler_params=pltpu.CompilerParams(
            dimension_semantics=("parallel",),
        ),
        cost_estimate=pl.CostEstimate(
            flops=flops, transcendentals=0, bytes_accessed=bytes_accessed),
    )(x_t, w1, b1, w2, b2, w3, b3)

    return out_t[:, :B]


def simple_unet_forward(x, t, params, *, tb_max=2048):
    """PyTorch-layout forward: x is [B, Din], returns [B, Dout].

    Convenience wrapper; in a sampling loop prefer simple_unet_forward_t and keep
    state transposed to avoid two HBM-sweeping XLA transposes per step.
    """
    return simple_unet_forward_t(x.T, t, params, tb_max=tb_max).T


def init_params(key, dtype=jnp.float32):
    """Deterministic init mirroring nn.Linear ([out, in] weights, [out, 1] biases)."""
    def linear(k, fan_in, fan_out):
        kw, kb = jax.random.split(k)
        bound = 1.0 / jnp.sqrt(fan_in)
        w = jax.random.uniform(kw, (fan_out, fan_in), dtype, -bound, bound)
        b = jax.random.uniform(kb, (fan_out, 1), dtype, -bound, bound)
        return w, b

    k1, k2, k3 = jax.random.split(key, 3)
    w1, b1 = linear(k1, 2, 64)
    w2, b2 = linear(k2, 64, 64)
    w3, b3 = linear(k3, 64, 2)
    return (w1, b1, w2, b2, w3, b3)


def reference_forward(x, params):
    w1, b1, w2, b2, w3, b3 = params
    h1 = jnp.maximum(x @ w1.T + b1.T, 0.0)
    h2 = jnp.maximum(h1 @ w2.T + b2.T, 0.0)
    return h2 @ w3.T + b3.T


if __name__ == "__main__":
    key = jax.random.PRNGKey(0)
    kx, kt, kp = jax.random.split(key, 3)

    B = 256
    x = jax.random.normal(kx, (B, 2), dtype=jnp.float32)
    t = jax.random.randint(kt, (B,), 0, 1000)  # ignored by forward, as in PyTorch
    params = init_params(kp)

    ref = reference_forward(x, params)

    # Preferred DDPM-loop path: keep state in [Din, B]/[Dout, B] layout, transpose
    # once outside the loop.
    x_t = x.T
    out_t = jax.block_until_ready(simple_unet_forward_t(x_t, t, params))
    assert out_t.shape == (2, B)
    # bf16 MXU operands (f32 accumulation) -> relaxed tolerance vs the f32 reference.
    assert jnp.allclose(out_t, ref.T, atol=5e-2, rtol=5e-2)

    # Compatibility wrapper matching the PyTorch [B, 2] API.
    out = jax.block_until_ready(simple_unet_forward(x, t, params))
    assert out.shape == (B, 2)
    assert jnp.allclose(out, ref, atol=5e-2, rtol=5e-2)

    print("KERNEL_OK")
</pallas_src>

<mosaic_0001>
module attributes {stable_mosaic.version = 11 : i64} {
  func.func @mlp_kernel(%arg0: i32, %arg1: memref<2x256xf32, #tpu.memory_space<vmem>>, %arg2: memref<64x2xf32, #tpu.memory_space<vmem>>, %arg3: memref<64x1xf32, #tpu.memory_space<vmem>>, %arg4: memref<64x64xf32, #tpu.memory_space<vmem>>, %arg5: memref<64x1xf32, #tpu.memory_space<vmem>>, %arg6: memref<2x64xf32, #tpu.memory_space<vmem>>, %arg7: memref<2x1xf32, #tpu.memory_space<vmem>>, %arg8: memref<2x256xf32, #tpu.memory_space<vmem>>) attributes {dimension_semantics = [#tpu.dimension_semantics<parallel>], iteration_bounds = array<i64: 1>, scalar_prefetch = 0 : i64, scratch_operands = 0 : i64, tpu.core_type = #tpu.core_type<tc>, window_params = [{transform_indices = @transform_0, window_bounds = array<i64: 2, 256>}, {pipeline_mode = #tpu.pipeline_mode<synchronous>, transform_indices = @transform_1, window_bounds = array<i64: 64, 2>}, {pipeline_mode = #tpu.pipeline_mode<synchronous>, transform_indices = @transform_2, window_bounds = array<i64: 64, 1>}, {pipeline_mode = #tpu.pipeline_mode<synchronous>, transform_indices = @transform_3, window_bounds = array<i64: 64, 64>}, {pipeline_mode = #tpu.pipeline_mode<synchronous>, transform_indices = @transform_4, window_bounds = array<i64: 64, 1>}, {pipeline_mode = #tpu.pipeline_mode<synchronous>, transform_indices = @transform_5, window_bounds = array<i64: 2, 64>}, {pipeline_mode = #tpu.pipeline_mode<synchronous>, transform_indices = @transform_6, window_bounds = array<i64: 2, 1>}, {transform_indices = @transform_7, window_bounds = array<i64: 2, 256>}]} {
    %c0 = arith.constant 0 : index
    %c0_0 = arith.constant 0 : index
    %0 = vector.load %arg2[%c0, %c0_0] : memref<64x2xf32, #tpu.memory_space<vmem>>, vector<64x1xf32>
    %c0_1 = arith.constant 0 : index
    %c1 = arith.constant 1 : index
    %1 = vector.load %arg2[%c0_1, %c1] : memref<64x2xf32, #tpu.memory_space<vmem>>, vector<64x1xf32>
    %c0_2 = arith.constant 0 : index
    %c0_3 = arith.constant 0 : index
    %2 = vector.load %arg3[%c0_2, %c0_3] : memref<64x1xf32, #tpu.memory_space<vmem>>, vector<64x1xf32>
    %c0_4 = arith.constant 0 : index
    %c0_5 = arith.constant 0 : index
    %3 = vector.load %arg5[%c0_4, %c0_5] : memref<64x1xf32, #tpu.memory_space<vmem>>, vector<64x1xf32>
    %c0_6 = arith.constant 0 : index
    %c0_7 = arith.constant 0 : index
    %4 = vector.load %arg7[%c0_6, %c0_7] : memref<2x1xf32, #tpu.memory_space<vmem>>, vector<2x1xf32>
    %c0_8 = arith.constant 0 : index
    %c0_9 = arith.constant 0 : index
    %5 = vector.load %arg4[%c0_8, %c0_9] : memref<64x64xf32, #tpu.memory_space<vmem>>, vector<64x64xf32>
    %6 = arith.truncf %5 : vector<64x64xf32> to vector<64x64xbf16>
    %c0_10 = arith.constant 0 : index
    %c0_11 = arith.constant 0 : index
    %7 = vector.load %arg6[%c0_10, %c0_11] : memref<2x64xf32, #tpu.memory_space<vmem>>, vector<2x64xf32>
    %8 = arith.truncf %7 : vector<2x64xf32> to vector<2x64xbf16>
    %c0_i32 = arith.constant 0 : i32
    %c256_i32 = arith.constant 256 : i32
    %9 = arith.muli %c0_i32, %c256_i32 : i32
    %c0_12 = arith.constant 0 : index
    %10 = arith.index_cast %9 : i32 to index
    %11 = vector.load %arg1[%c0_12, %10] : memref<2x256xf32, #tpu.memory_space<vmem>>, vector<2x256xf32>
    %12 = vector.extract_strided_slice %11 {offsets = [0, 0], sizes = [1, 256], strides = [1, 1]} : vector<2x256xf32> to vector<1x256xf32>
    %13 = vector.extract_strided_slice %11 {offsets = [1, 0], sizes = [1, 256], strides = [1, 1]} : vector<2x256xf32> to vector<1x256xf32>
    %14 = vector.broadcast %0 : vector<64x1xf32> to vector<64x256xf32>
    %15 = vector.broadcast %12 : vector<1x256xf32> to vector<64x256xf32>
    %16 = arith.mulf %14, %15 : vector<64x256xf32>
    %17 = vector.broadcast %1 : vector<64x1xf32> to vector<64x256xf32>
    %18 = vector.broadcast %13 : vector<1x256xf32> to vector<64x256xf32>
    %19 = arith.mulf %17, %18 : vector<64x256xf32>
    %20 = arith.addf %16, %19 : vector<64x256xf32>
    %21 = vector.broadcast %2 : vector<64x1xf32> to vector<64x256xf32>
    %22 = arith.addf %20, %21 : vector<64x256xf32>
    %cst = arith.constant 0.000000e+00 : f32
    %23 = vector.broadcast %cst : f32 to vector<64x256xf32>
    %24 = arith.maximumf %22, %23 : vector<64x256xf32>
    %25 = arith.truncf %24 : vector<64x256xf32> to vector<64x256xbf16>
    %cst_13 = arith.constant dense<0.000000e+00> : vector<64x256xf32>
    %26 = tpu.matmul %6, %25, %cst_13 {dimension_numbers = #tpu.dot_dimension_numbers<[1], [0], [0], [1], [0, 0, 1, 1], [], []>} : vector<64x64xbf16>, vector<64x256xbf16>, vector<64x256xf32> -> vector<64x256xf32>
    %27 = vector.broadcast %3 : vector<64x1xf32> to vector<64x256xf32>
    %28 = arith.addf %26, %27 : vector<64x256xf32>
    %cst_14 = arith.constant 0.000000e+00 : f32
    %29 = vector.broadcast %cst_14 : f32 to vector<64x256xf32>
    %30 = arith.maximumf %28, %29 : vector<64x256xf32>
    %31 = arith.truncf %30 : vector<64x256xf32> to vector<64x256xbf16>
    %cst_15 = arith.constant dense<0.000000e+00> : vector<2x256xf32>
    %32 = tpu.matmul %8, %31, %cst_15 {dimension_numbers = #tpu.dot_dimension_numbers<[1], [0], [0], [1], [0, 0, 1, 1], [], []>} : vector<2x64xbf16>, vector<64x256xbf16>, vector<2x256xf32> -> vector<2x256xf32>
    %33 = vector.broadcast %4 : vector<2x1xf32> to vector<2x256xf32>
    %34 = arith.addf %32, %33 : vector<2x256xf32>
    %c0_16 = arith.constant 0 : index
    %35 = arith.index_cast %9 : i32 to index
    %36 = vector.load %arg8[%c0_16, %35] : memref<2x256xf32, #tpu.memory_space<vmem>>, vector<2x256xf32>
    tpu.vector_store %arg8[%c0_16, %35], %34 {strides = array<i32>} : memref<2x256xf32, #tpu.memory_space<vmem>>, vector<2x256xf32>,
    %c1_i32 = arith.constant 1 : i32
    return
  }
  func.func @transform_0(%arg0: i32) -> (i32, i32) {
    %c0_i32 = arith.constant 0 : i32
    %c0_i32_0 = arith.constant 0 : i32
    return %c0_i32, %arg0 : i32, i32
  }
  func.func @transform_1(%arg0: i32) -> (i32, i32) {
    %c0_i32 = arith.constant 0 : i32
    %c0_i32_0 = arith.constant 0 : i32
    %c0_i32_1 = arith.constant 0 : i32
    return %c0_i32, %c0_i32_0 : i32, i32
  }
  func.func @transform_2(%arg0: i32) -> (i32, i32) {
    %c0_i32 = arith.constant 0 : i32
    %c0_i32_0 = arith.constant 0 : i32
    %c0_i32_1 = arith.constant 0 : i32
    return %c0_i32, %c0_i32_0 : i32, i32
  }
  func.func @transform_3(%arg0: i32) -> (i32, i32) {
    %c0_i32 = arith.constant 0 : i32
    %c0_i32_0 = arith.constant 0 : i32
    %c0_i32_1 = arith.constant 0 : i32
    return %c0_i32, %c0_i32_0 : i32, i32
  }
  func.func @transform_4(%arg0: i32) -> (i32, i32) {
    %c0_i32 = arith.constant 0 : i32
    %c0_i32_0 = arith.constant 0 : i32
    %c0_i32_1 = arith.constant 0 : i32
    return %c0_i32, %c0_i32_0 : i32, i32
  }
  func.func @transform_5(%arg0: i32) -> (i32, i32) {
    %c0_i32 = arith.constant 0 : i32
    %c0_i32_0 = arith.constant 0 : i32
    %c0_i32_1 = arith.constant 0 : i32
    return %c0_i32, %c0_i32_0 : i32, i32
  }
  func.func @transform_6(%arg0: i32) -> (i32, i32) {
    %c0_i32 = arith.constant 0 : i32
    %c0_i32_0 = arith.constant 0 : i32
    %c0_i32_1 = arith.constant 0 : i32
    return %c0_i32, %c0_i32_0 : i32, i32
  }
  func.func @transform_7(%arg0: i32) -> (i32, i32) {
    %c0_i32 = arith.constant 0 : i32
    %c0_i32_0 = arith.constant 0 : i32
    return %c0_i32, %arg0 : i32, i32
  }
}

</mosaic_0001>

<bundles_post_ra>
// kernel: tpu_custom_call.1
= control target key start
LH: loop header
LB: loop body
LE: loop exit
PB: predicated region body
PF: predicated region fallthrough
CT: control target
= control target key end

     0   :  { %v571_v2 = vmov 1   ;;  %v572_v5 = vmov 0   ;;  %s785_s0 = inlined_call_operand.vmem [shape: f32[2,256], index: 0, kind: input, shape index: {}]   ;;  %s786_s1 = inlined_call_operand.vmem [shape: f32[64,2], index: 1, kind: input, shape index: {}]   ;;  %s787_s2 = inlined_call_operand.vmem [shape: f32[64,1], index: 2, kind: input, shape index: {}]   ;;  %s788_s3 = inlined_call_operand.vmem [shape: f32[64,64], index: 3, kind: input, shape index: {}]   ;;  %s789_s4 = inlined_call_operand.vmem [shape: f32[64,1], index: 4, kind: input, shape index: {}]   ;;  %s790_s5 = inlined_call_operand.vmem [shape: f32[2,64], index: 5, kind: input, shape index: {}]   ;;  %s791_s6 = inlined_call_operand.vmem [shape: f32[2,1], index: 6, kind: input, shape index: {}]   ;;  %s792_s7 = inlined_call_operand.hbm [shape: f32[2,256], index: 7, kind: output, shape index: {}]  }
   0x1   :  { %v34_v0 = vld [vmem:[%s786_s1 + $0x30] sm:$0xff]  ;;  %v32_v1 = vld [vmem:[%s786_s1 + $0x20] sm:$0xff]  ;;  %541 = vset.pattern.permute.xlu0 %v571_v2  ;;  %539 = vset.pattern.permute.xlu1 %v571_v2  ;;  %v35_v3 = vld [vmem:[%s786_s1 + $0x38] sm:$0xff] }
   0x2   :  { %168 = vperm.xlu1 %539, %v34_v0   ;;  %160 = vperm.xlu0 %541, %v32_v1   ;;  %v30_v4 = vld [vmem:[%s786_s1 + $0x10] sm:$0xff]  ;;  %v28_v6 = vld [vmem:[%s786_s1] sm:$0xff]  ;;  %v33_v7 = vld [vmem:[%s786_s1 + $0x28] sm:$0xff] }
   0x3   :  { %390 = vmatprep.mubr.bf16.mxu0 %v572_v5  ;;  %495 = vmatprep.mubr.bf16.mxu1 %v572_v5 }
   0x6   :  { %172 = vperm.xlu1 %539, %v35_v3   ;;  %152 = vperm.xlu0 %541, %v30_v4  }
   0x7   :  { %12 = vsyncpa [#allocation3], 0  ;;  %v42_v8 = vld [vmem:[%s787_s2 + $0x30] sm:$0xff]  ;;  %v43_v9 = vld [vmem:[%s787_s2 + $0x38] sm:$0xff]  ;;  %v109_v27 = vlaneseq  ;;  %vm345_vm0 = vcmask 523264   ;;  %s573_s18 = smov [#allocation2]  }
   0x8   :  { %v31_v10 = vld [vmem:[%s786_s1 + $0x18] sm:$0xff]  ;;  %v41_v11 = vld [vmem:[%s787_s2 + $0x28] sm:$0xff]  ;;  %v40_v13 = vld [vmem:[%s787_s2 + $0x20] sm:$0xff]  ;;  %s522_s19 = sshll.u32 %s573_s18, 4  ;;  %s523_s19 = int_to_ptr.vmem [resolvable:$true] %s522_s19 }
   0x9   :  { %v39_v12 = vld [vmem:[%s787_s2 + $0x18] sm:$0xff]  ;;  %v50_v14 = vld [vmem:[%s789_s4 + $0x30] sm:$0xff]  ;;  %v48_v15 = vld [vmem:[%s789_s4 + $0x20] sm:$0xff]  ;;  %v110_v30 = vshrl.u32 %v109_v27, 7  ;;  %p554_p1 = scmp.lt.s32.totalorder %s523_s19, %s523_s19 }
   0xa   :  { %540 = vset.pattern.permute.xlu1 %v572_v5  ;;  %144 = vperm.xlu0 %541, %v28_v6   ;;  %v46_v16 = vld [vmem:[%s789_s4 + $0x10] sm:$0xff]  ;;  %v29_v17 = vld [vmem:[%s786_s1 + $0x8] sm:$0xff]  ;;  %v44_v18 = vld [vmem:[%s789_s4] sm:$0xff] }
   0xb   :  { %95 = vperm.xlu1 %540, %v33_v7   ;;  %v52_v19 = vld [vmem:[%s791_s6] sm:$0x3]  ;;  %v38_v20 = vld [vmem:[%s787_s2 + $0x10] sm:$0xff]  ;;  %v37_v22 = vld [vmem:[%s787_s2 + $0x8] sm:$0xff]  ;;  %v177_v33 = vsub.s32 1, %v110_v30  ;;  %v181_v34 = vsub.s32 3, %v110_v30 }
   0xc   :  { %v36_v21 = vld [vmem:[%s787_s2] sm:$0xff]  ;;  %v51_v23 = vld [vmem:[%s789_s4 + $0x38] sm:$0xff]  ;;  %v49_v24 = vld [vmem:[%s789_s4 + $0x28] sm:$0xff]  ;;  %v111_v35 = vsub.s32 0, %v110_v30  ;;  %v115_v36 = vsub.s32 2, %v110_v30  ;;  %s549_s6 = scalar_lea.vmem %s523_s19, 64 }
   0xd   :  { %v47_v25 = vld [vmem:[%s789_s4 + $0x18] sm:$0xff]  ;;  %v45_v26 = vld [vmem:[%s789_s4 + $0x8] sm:$0xff]  ;;  %v67_v38 = vld [vmem:[%s785_s0] sm:$0xf]  ;;  %p550_p0 = scmp.ne.s32.totalorder %s523_s19, %s549_s6  ;;  %p555_p2 = scmp.lt.s32.totalorder %s549_s6, %s549_s6 }
   0xe   :  { %546 = vset.pattern.permute.xlu0 %v572_v5  ;;  %v178_v40 = vrot.slane %v67_v38, %v177_v33  ;;  %v182_v41 = vrot.slane %v67_v38, %v181_v34  ;;  %v112_v42 = vrot.slane %v67_v38, %v111_v35  ;;  %v116_v43 = vrot.slane %v67_v38, %v115_v36 }
   0xf   :  { %542 = vset.pattern.permute.xlu1 %v571_v2  ;;  %100 = vperm.xlu0 %546, %v34_v0   ;;  %p556_p3 = por %p555_p2, %p554_p1 }
  0x10   :  { %164 = vperm.xlu1 %542, %v33_v7   ;;  %v703_v46 = vrot.slane %v178_v40, %v177_v33  ;;  %v705_v47 = vrot.slane %v182_v41, %v177_v33  ;;  %v707_v48 = vrot.slane %v112_v42, %v111_v35  ;;  %v709_v49 = vrot.slane %v116_v43, %v111_v35 }
  0x11   :  { %p557_p4 = pnand %p556_p3, %p550_p0 }
  0x13   :  { %105 = vperm.xlu0 %546, %v35_v3  }
  0x14   :  { %543 = vset.pattern.permute.xlu1 %v572_v5 }
  0x15   :  { %257 = vperm.xlu1 %543, %v42_v8  }
  0x17   :  { %90 = vperm.xlu0 %546, %v32_v1  }
  0x19   :  { %80 = vperm.xlu1 %543, %v30_v4  }
  0x1b   :  { %262 = vperm.xlu0 %546, %v43_v9  }
  0x1d   :  { %85 = vperm.xlu1 %543, %v31_v10  }
  0x1f   :  { %252 = vperm.xlu0 %546, %v41_v11  }
  0x21   :  { %544 = vset.pattern.permute.xlu1 %v571_v2 }
  0x22   :  { %156 = vperm.xlu1 %544, %v31_v10  }
  0x23   :  { %242 = vperm.xlu0 %546, %v39_v12  }
  0x26   :  { %545 = vset.pattern.permute.xlu1 %v572_v5 }
  0x27   :  { %247 = vperm.xlu1 %545, %v40_v13   ;;  %337 = vperm.xlu0 %546, %v50_v14  }
  0x2b   :  { %327 = vperm.xlu0 %546, %v48_v15   ;;  %70 = vperm.xlu1 %545, %v28_v6  }
  0x2f   :  { %317 = vperm.xlu0 %546, %v46_v16   ;;  %75 = vperm.xlu1 %545, %v29_v17  }
  0x33   :  { %307 = vperm.xlu0 %546, %v44_v18   ;;  %547 = vset.pattern.permute.xlu1 %v571_v2 }
  0x34   :  { %148 = vperm.xlu1 %547, %v29_v17  }
  0x37   :  { %457 = vperm.xlu0 %546, %v52_v19  }
  0x38   :  { %548 = vset.pattern.permute.xlu1 %v572_v5 }
  0x39   :  { %237 = vperm.xlu1 %548, %v38_v20  }
  0x3d   :  { %227 = vperm.xlu1 %548, %v36_v21  }
  0x41   :  { %232 = vperm.xlu1 %548, %v37_v22  }
  0x45   :  { %342 = vperm.xlu1 %548, %v51_v23  }
  0x49   :  { %332 = vperm.xlu1 %548, %v49_v24  }
  0x4d   :  { %322 = vperm.xlu1 %548, %v47_v25  }
  0x51   :  { %312 = vperm.xlu1 %548, %v45_v26  }
  0x7d   :  { %v169_v28 = vpop.permute.xlu1 %168  ;;  %v161_v29 = vpop.permute.xlu0 %160 }
  0x7e   :  { %v205_v54 = vmul.f32 %v703_v46, %v169_v28  ;;  %v206_v55 = vmul.f32 %v705_v47, %v169_v28  ;;  %v201_v17 = vmul.f32 %v703_v46, %v161_v29  ;;  %v202_v18 = vmul.f32 %v705_v47, %v161_v29 }
  0x81   :  { %v173_v31 = vpop.permute.xlu1 %172  ;;  %v696_v32 = vpop.permute.xlu0 %152 }
  0x82   :  { %v207_v59 = vmul.f32 %v703_v46, %v173_v31  ;;  %v208_v60 = vmul.f32 %v705_v47, %v173_v31 }
  0x85   :  { %v698_v37 = vpop.permute.xlu0 %144 }
  0x86   :  { %v96_v39 = vpop.permute.xlu1 %95 }
  0x87   :  { %v137_v19 = vmul.f32 %v707_v48, %v96_v39  ;;  %v138_v20 = vmul.f32 %v709_v49, %v96_v39 }
  0x8a   :  { %v101_v44 = vpop.permute.xlu0 %100 }
  0x8b   :  { %v165_v45 = vpop.permute.xlu1 %164  ;;  %v139_v51 = vmul.f32 %v707_v48, %v101_v44  ;;  %v140_v52 = vmul.f32 %v709_v49, %v101_v44 }
  0x8c   :  { %v203_v13 = vmul.f32 %v703_v46, %v165_v45  ;;  %v204_v14 = vmul.f32 %v705_v47, %v165_v45 }
  0x8d   :  { %v221_v61 = vadd.f32 %v205_v54, %v139_v51  ;;  %v222_v62 = vadd.f32 %v206_v55, %v140_v52  ;;  %v197_v54 = vmul.f32 %v703_v46, %v696_v32  ;;  %v198_v55 = vmul.f32 %v705_v47, %v696_v32 }
  0x8e   :  { %v106_v50 = vpop.permute.xlu0 %105  ;;  %v219_v25 = vadd.f32 %v203_v13, %v137_v19  ;;  %v220_v26 = vadd.f32 %v204_v14, %v138_v20  ;;  %v193_v32 = vmul.f32 %v703_v46, %v698_v37 }
  0x8f   :  { %v141_v56 = vmul.f32 %v707_v48, %v106_v50  ;;  %v142_v57 = vmul.f32 %v709_v49, %v106_v50 }
  0x90   :  { %v258_v53 = vpop.permute.xlu1 %257 }
  0x91   :  { %v277_v0 = vadd.f32 %v258_v53, %v221_v61  ;;  %v278_v1 = vadd.f32 %v258_v53, %v222_v62  ;;  %v223_v2 = vadd.f32 %v207_v59, %v141_v56  ;;  %v224_v3 = vadd.f32 %v208_v60, %v142_v57 }
  0x92   :  { %v91_v58 = vpop.permute.xlu0 %90 }
  0x93   :  { %v293_v9 = vmax.f32 %v277_v0, 0.0  ;;  %v294_v11 = vmax.f32 %v278_v1, 0.0  ;;  %v135_v21 = vmul.f32 %v707_v48, %v91_v58  ;;  %v136_v22 = vmul.f32 %v709_v49, %v91_v58 }
  0x94   :  { %v81_v63 = vpop.permute.xlu1 %80 }
  0x95   :  { %v217_v30 = vadd.f32 %v201_v17, %v135_v21  ;;  %v218_v31 = vadd.f32 %v202_v18, %v136_v22  ;;  %v131_v56 = vmul.f32 %v707_v48, %v81_v63  ;;  %v132_v57 = vmul.f32 %v709_v49, %v81_v63 }
  0x96   :  { %v263_v4 = vpop.permute.xlu0 %262 }
  0x97   :  { %v279_v6 = vadd.f32 %v263_v4, %v223_v2  ;;  %v280_v7 = vadd.f32 %v263_v4, %v224_v3  ;;  %v213_v62 = vadd.f32 %v197_v54, %v131_v56  ;;  %v214_v0 = vadd.f32 %v198_v55, %v132_v57 }
  0x98   :  { %v86_v8 = vpop.permute.xlu1 %85 }
  0x99   :  { %v295_v10 = vmax.f32 %v279_v6, 0.0  ;;  %v296_v12 = vmax.f32 %v280_v7, 0.0  ;;  %v133_v50 = vmul.f32 %v707_v48, %v86_v8  ;;  %v134_v51 = vmul.f32 %v709_v49, %v86_v8 }
  0x9a   :  { %v253_v24 = vpop.permute.xlu0 %252  ;;  %v194_v7 = vmul.f32 %v705_v47, %v698_v37 }
  0x9b   :  { %v304_v15 = vpack.c.bf16 %v296_v12, %v294_v11  ;;  %v303_v16 = vpack.c.bf16 %v295_v10, %v293_v9  ;;  %v275_v27 = vadd.f32 %v253_v24, %v219_v25  ;;  %v276_v28 = vadd.f32 %v253_v24, %v220_v26 }
  0x9d   :  { %v157_v23 = vpop.permute.xlu1 %156  ;;  %366 = vmatprep.subr.bf16.mxu0 %v304_v15  ;;  %v291_v35 = vmax.f32 %v275_v27, 0.0  ;;  %v292_v36 = vmax.f32 %v276_v28, 0.0 }
  0x9e   :  { %367 = vmatpush1.bf16.msra.mxu0 %v303_v16  ;;  %v199_v43 = vmul.f32 %v703_v46, %v157_v23  ;;  %v200_v44 = vmul.f32 %v705_v47, %v157_v23  ;;  %v243_v59 = vpop.permute.xlu0 %242 }
  0xa0   :  { %v215_v52 = vadd.f32 %v199_v43, %v133_v50  ;;  %v216_v53 = vadd.f32 %v200_v44, %v134_v51 }
  0xa2   :  { %v248_v33 = vpop.permute.xlu1 %247  ;;  %v271_v60 = vadd.f32 %v243_v59, %v215_v52  ;;  %v272_v61 = vadd.f32 %v243_v59, %v216_v53  ;;  %v338_v56 = vpop.permute.xlu0 %337 }
  0xa3   :  { %v273_v29 = vadd.f32 %v248_v33, %v217_v30  ;;  %v274_v34 = vadd.f32 %v248_v33, %v218_v31  ;;  %v55_v33 = vld [vmem:[%s788_s3 + $0x10] sm:$0xff] }
  0xa4   :  { %v287_v63 = vmax.f32 %v271_v60, 0.0  ;;  %v288_v8 = vmax.f32 %v272_v61, 0.0 }
  0xa5   :  { %v289_v38 = vmax.f32 %v273_v29, 0.0  ;;  %v290_v39 = vmax.f32 %v274_v34, 0.0  ;;  %v56_v29 = vld [vmem:[%s788_s3 + $0x18] sm:$0xff] }
  0xa6   :  { %v71_v40 = vpop.permute.xlu1 %70  ;;  %v62_v34 = vpack.c.bf16 %v56_v29, %v55_v33  ;;  %v328_v61 = vpop.permute.xlu0 %327 }
  0xa7   :  { %v302_v41 = vpack.c.bf16 %v292_v36, %v290_v39  ;;  %v301_v42 = vpack.c.bf16 %v291_v35, %v289_v38  ;;  %v127_v1 = vmul.f32 %v707_v48, %v71_v40  ;;  %v128_v2 = vmul.f32 %v709_v49, %v71_v40  ;;  %v57_v35 = vld [vmem:[%s788_s3 + $0x20] sm:$0xff]  ;;  %v58_v36 = vld [vmem:[%s788_s3 + $0x28] sm:$0xff]  ;;  %v59_v39 = vld [vmem:[%s788_s3 + $0x30] sm:$0xff] }
  0xa8   :  { %v63_v38 = vpack.c.bf16 %v58_v36, %v57_v35  ;;  %v60_v40 = vld [vmem:[%s788_s3 + $0x38] sm:$0xff] }
  0xa9   :  { %368 = vmatprep.subr.bf16.mxu0 %v302_v41  ;;  %v209_v13 = vadd.f32 %v193_v32, %v127_v1  ;;  %v210_v14 = vadd.f32 %v194_v7, %v128_v2  ;;  %v64_v41 = vpack.c.bf16 %v60_v40, %v59_v39 }
  0xaa   :  { %369 = vmatpush1.bf16.msra.mxu0 %v301_v42  ;;  %v76_v45 = vpop.permute.xlu1 %75 }
  0xab   :  { %v129_v16 = vmul.f32 %v707_v48, %v76_v45  ;;  %v130_v17 = vmul.f32 %v709_v49, %v76_v45  ;;  %v53_v48 = vld [vmem:[%s788_s3] sm:$0xff]  ;;  %v54_v49 = vld [vmem:[%s788_s3 + $0x8] sm:$0xff] }
  0xac   :  { %v61_v31 = vpack.c.bf16 %v54_v49, %v53_v48 }
  0xaf   :  { %v149_v58 = vpop.permute.xlu1 %148 }
  0xb0   :  { %v195_v9 = vmul.f32 %v703_v46, %v149_v58  ;;  %v196_v10 = vmul.f32 %v705_v47, %v149_v58 }
  0xb2   :  { %v211_v37 = vadd.f32 %v195_v9, %v129_v16  ;;  %v212_v22 = vadd.f32 %v196_v10, %v130_v17 }
  0xb4   :  { %v238_v3 = vpop.permute.xlu1 %237 }
  0xb5   :  { %v269_v4 = vadd.f32 %v238_v3, %v213_v62  ;;  %v270_v6 = vadd.f32 %v238_v3, %v214_v0 }
  0xb7   :  { %v285_v11 = vmax.f32 %v269_v4, 0.0  ;;  %v286_v12 = vmax.f32 %v270_v6, 0.0 }
  0xb8   :  { %v228_v15 = vpop.permute.xlu1 %227 }
  0xb9   :  { %v300_v18 = vpack.c.bf16 %v288_v8, %v286_v12  ;;  %v299_v19 = vpack.c.bf16 %v287_v63, %v285_v11  ;;  %v265_v20 = vadd.f32 %v228_v15, %v209_v13  ;;  %v266_v21 = vadd.f32 %v228_v15, %v210_v14  ;;  %v318_v8 = vpop.permute.xlu0 %317 }
  0xbb   :  { %370 = vmatprep.subr.bf16.mxu0 %v300_v18  ;;  %v281_v24 = vmax.f32 %v265_v20, 0.0  ;;  %v282_v25 = vmax.f32 %v266_v21, 0.0 }
  0xbc   :  { %371 = vmatpush1.bf16.msra.mxu0 %v299_v19  ;;  %v233_v46 = vpop.permute.xlu1 %232 }
  0xbd   :  { %v267_v23 = vadd.f32 %v233_v46, %v211_v37  ;;  %v268_v47 = vadd.f32 %v233_v46, %v212_v22 }
  0xbf   :  { %v283_v26 = vmax.f32 %v267_v23, 0.0  ;;  %v284_v27 = vmax.f32 %v268_v47, 0.0 }
  0xc0   :  { %v343_v54 = vpop.permute.xlu1 %342 }
  0xc1   :  { %v298_v28 = vpack.c.bf16 %v284_v27, %v282_v25  ;;  %v297_v30 = vpack.c.bf16 %v283_v26, %v281_v24  ;;  %v308_v24 = vpop.permute.xlu0 %307 }
  0xc3   :  { %372 = vmatprep.subr.bf16.mxu0 %v298_v28 }
  0xc4   :  { %373 = vmatpush1.bf16.msra.mxu0 %v297_v30  ;;  %v333_v59 = vpop.permute.xlu1 %332 }
  0xc7   :  { %530 = vmatmul.mubr.msk.bf16.vlgmr.msra.gmra.mxu0 %vm345_vm0, %v61_v31 }
  0xc8   :  { %400 = vmatprep.mubr.bf16.mxu0 %v572_v5  ;;  %v323_v4 = vpop.permute.xlu1 %322 }
  0xcc   :  { %v313_v20 = vpop.permute.xlu1 %312 }
  0xcf   :  { %531 = vmatmul.mubr.msk.bf16.gmra.mxu0 %vm345_vm0, %v62_v34 }
  0xd0   :  { %410 = vmatprep.mubr.bf16.mxu0 %v572_v5 }
  0xd7   :  { %532 = vmatmul.mubr.msk.bf16.gmra.mxu0 %vm345_vm0, %v63_v38 }
  0xd8   :  { %420 = vmatprep.mubr.bf16.mxu0 %v572_v5 }
  0xdf   :  { %533 = vmatmul.mubr.msk.bf16.gmra.mxu0 %vm345_vm0, %v64_v41  ;;  %v65_v41 = vld [vmem:[%s790_s5] sm:$0x3] }
 0x187   :  { %v392_v42 = vpop.f32.mrf.mxu0 }
 0x188   :  { %v393_v29 = vadd.f32 %v392_v42, %v308_v24 }
 0x189   :  { %v394_v43 = vpop.f32.mrf.mxu0 }
 0x18a   :  { %v395_v27 = vadd.f32 %v394_v43, %v308_v24  ;;  %v431_v40 = vmax.f32 %v393_v29, 0.0 }
 0x18b   :  { %v396_v44 = vpop.f32.mrf.mxu0 }
 0x18c   :  { %v397_v49 = vadd.f32 %v396_v44, %v313_v20  ;;  %v432_v35 = vmax.f32 %v395_v27, 0.0  ;;  %v66_v44 = vpack.c.bf16 %v65_v41, %v65_v41 }
 0x18d   :  { %v398_v45 = vpop.f32.mrf.mxu0 }
 0x18e   :  { %v399_v46 = vadd.f32 %v398_v45, %v313_v20  ;;  %v433_v36 = vmax.f32 %v397_v49, 0.0  ;;  %v458_v45 = vpop.permute.xlu0 %457 }
 0x18f   :  { %v402_v50 = vpop.f32.mrf.mxu0 }
 0x190   :  { %v403_v25 = vadd.f32 %v402_v50, %v318_v8  ;;  %v434_v31 = vmax.f32 %v399_v46, 0.0  ;;  %v447_v43 = vpack.c.bf16 %v433_v36, %v431_v40 }
 0x191   :  { %v404_v51 = vpop.f32.mrf.mxu0 }
 0x192   :  { %v405_v17 = vadd.f32 %v404_v51, %v318_v8  ;;  %v435_v34 = vmax.f32 %v403_v25, 0.0  ;;  %v448_v39 = vpack.c.bf16 %v434_v31, %v432_v35 }
 0x193   :  { %v406_v52 = vpop.f32.mrf.mxu0 }
 0x194   :  { %v407_v21 = vadd.f32 %v406_v52, %v323_v4  ;;  %v436_v48 = vmax.f32 %v405_v17, 0.0 }
 0x195   :  { %v408_v53 = vpop.f32.mrf.mxu0 }
 0x196   :  { %v409_v11 = vadd.f32 %v408_v53, %v323_v4  ;;  %v437_v28 = vmax.f32 %v407_v21, 0.0 }
 0x197   :  { %v412_v5 = vpop.f32.mrf.mxu0 }
 0x198   :  { %v413_v15 = vadd.f32 %v412_v5, %v328_v61  ;;  %v438_v23 = vmax.f32 %v409_v11, 0.0  ;;  %v449_v38 = vpack.c.bf16 %v437_v28, %v435_v34 }
 0x199   :  { %v414_v55 = vpop.f32.mrf.mxu0 }
 0x19a   :  { %v415_v7 = vadd.f32 %v414_v55, %v328_v61  ;;  %v439_v26 = vmax.f32 %v413_v15, 0.0  ;;  %v450_v33 = vpack.c.bf16 %v438_v23, %v436_v48 }
 0x19b   :  { %v416_v57 = vpop.f32.mrf.mxu0 }
 0x19c   :  { %v417_v9 = vadd.f32 %v416_v57, %v333_v59  ;;  %v440_v18 = vmax.f32 %v415_v7, 0.0 }
 0x19d   :  { %v418_v58 = vpop.f32.mrf.mxu0 }
 0x19e   :  { %v419_v1 = vadd.f32 %v418_v58, %v333_v59  ;;  %v441_v37 = vmax.f32 %v417_v9, 0.0 }
 0x19f   :  { %v422_v60 = vpop.f32.mrf.mxu0 }
 0x1a0   :  { %v423_v6 = vadd.f32 %v422_v60, %v338_v56  ;;  %v442_v12 = vmax.f32 %v419_v1, 0.0  ;;  %v451_v30 = vpack.c.bf16 %v441_v37, %v439_v26 }
 0x1a1   :  { %v424_v62 = vpop.f32.mrf.mxu0 }
 0x1a2   :  { %v425_v2 = vadd.f32 %v424_v62, %v338_v56  ;;  %v443_v16 = vmax.f32 %v423_v6, 0.0  ;;  %v452_v47 = vpack.c.bf16 %v442_v12, %v440_v18 }
 0x1a3   :  { %v426_v0 = vpop.f32.mrf.mxu0 }
 0x1a4   :  { %v427_v3 = vadd.f32 %v426_v0, %v343_v54  ;;  %v444_v13 = vmax.f32 %v425_v2, 0.0 }
 0x1a5   :  { %v428_v32 = vpop.f32.mrf.mxu0 }
 0x1a6   :  { %v429_v63 = vadd.f32 %v428_v32, %v343_v54  ;;  %v445_v10 = vmax.f32 %v427_v3, 0.0 }
 0x1a8   :  { %v446_v14 = vmax.f32 %v429_v63, 0.0  ;;  %v453_v22 = vpack.c.bf16 %v445_v10, %v443_v16 }
 0x1aa   :  { %v454_v19 = vpack.c.bf16 %v446_v14, %v444_v13 }
 0x1ac   :  { %471 = vmatprep.subr.bf16.mxu1 %v454_v19 }
 0x1ad   :  { %472 = vmatpush1.bf16.msra.mxu1 %v453_v22 }
 0x1ae   :  { %473 = vmatprep.subr.bf16.mxu1 %v452_v47 }
 0x1b1   :  { %474 = vmatpush1.bf16.msra.mxu1 %v451_v30 }
 0x1b2   :  { %475 = vmatprep.subr.bf16.mxu1 %v450_v33 }
 0x1b5   :  { %476 = vmatpush1.bf16.msra.mxu1 %v449_v38 }
 0x1b6   :  { %477 = vmatprep.subr.bf16.mxu1 %v448_v39 }
 0x1b9   :  { %478 = vmatpush1.bf16.msra.mxu1 %v447_v43 }
 0x1bc   :  { %534 = vmatmul.mubr.msk.bf16.vlgmr.msra.gmra.mxu1 %vm345_vm0, %v66_v44 }
 0x27c   :  { %v497_v42 = vpop.f32.mrf.mxu1 }
 0x27d   :  { %v498_v51 = vadd.f32 %v497_v42, %v458_v45 }
 0x27e   :  { %v499_v50 = vpop.f32.mrf.mxu1 }
 0x27f   :  { %v500_v52 = vadd.f32 %v499_v50, %v458_v45 }
 0x280   :  { %v501_v53 = vpop.f32.mrf.mxu1 }
 0x281   :  { %v506_v5 = vcombine.low %v498_v51, %v500_v52 }
 0x282   :  { %v502_v54 = vpop.f32.mrf.mxu1 }
 0x283   :  { %535 = vst.sshfl [vmem:[#allocation2] sm:$0x33 pattern:$0x76325410] %v506_v5 }
 0x284   :  { %560 = shalt.err (!%p557_p4)
}
 0x285   :  { %525 = dma.vmem_to_hbm [thread:$0]  %s523_s19, 64, %s792_s7, [#allocation3]  }
 0x286   :  { %569 = dma.done.wait [#allocation3], 64  }
 0x287   :  { %570 = vsyncadd [#allocation3], 4294967232 }
 0x288   :  { %529 = vsyncpa [#allocation3], 1 }

</bundles_post_ra>
